<compile_context>
chip_gen: v7x
topology: tpu7x:2x2x1
jax: 0.10.0
libtpu: 0.0.40
codegen_flags: <defaults>
</compile_context>

<pallas_src>
import math
import functools

import jax
import jax.numpy as jnp
from jax import lax
from jax.experimental import pallas as pl
from jax.experimental.pallas import tpu as pltpu


def _cdiv(a, b):
    return -(-a // b)


def _round_up(a, b):
    return _cdiv(a, b) * b


def _conv1d_kernel(xm_ref, xh_ref, w_ref, b_ref, o_ref, *,
                   kernel_size, dilation, tile_l):
    # xm_ref: (1, C_in, TILE_L)     main input columns of this output tile
    # xh_ref: (1, C_in, HALO_PAD)   the columns right after the tile (halo)
    # w_ref : (C_out, K*C_in)       taps folded into the contraction dim
    # b_ref : (C_out, 1)
    # o_ref : (1, C_out, TILE_L)
    x = jnp.concatenate([xm_ref[0], xh_ref[0]], axis=-1)   # (C_in, TILE_L+HALO_PAD)
    parts = [x[:, k * dilation: k * dilation + tile_l]
             for k in range(kernel_size)]
    xs = jnp.concatenate(parts, axis=0)                     # (K*C_in, TILE_L)
    acc = jnp.dot(w_ref[...], xs, preferred_element_type=jnp.float32)
    acc = acc + b_ref[...]                                  # bias broadcast over L
    o_ref[0] = acc.astype(o_ref.dtype)


def _conv1d_k1_kernel(xm_ref, w_ref, b_ref, o_ref):
    # Pointwise (K == 1) conv: a single matmul per tile, no halo operand.
    acc = jnp.dot(w_ref[...], xm_ref[0], preferred_element_type=jnp.float32)
    o_ref[0] = (acc + b_ref[...]).astype(o_ref.dtype)


def _pallas_conv1d_stride1(x, weight, bias, dilation, pad_l, pad_r, tile_l=512):
    """Stride-1, groups-1, dilated conv.

    x      : (N, C_in, L)      -- UNPADDED input
    weight : (C_out, C_in, K)
    bias   : (C_out,)
    pad_l/pad_r : conv padding (SAME / int), applied here together with the
                  tile-alignment padding in one jnp.pad pass.
    """
    n, c_in, l_in = x.shape
    c_out, c_in_w, k = weight.shape
    assert c_in == c_in_w
    halo = (k - 1) * dilation
    l_pad = l_in + pad_l + pad_r
    out_len = l_pad - halo
    assert out_len > 0

    # 128-lane aligned tile sizes; TILE_L a multiple of HALO_PAD so the halo
    # block can be addressed with plain blocked indexing.
    halo_pad = 0 if k == 1 else 128 * max(1, _cdiv(halo, 128))
    tl = min(tile_l, _round_up(out_len, 128))
    tl = max(tl, 128)
    tl = _round_up(tl, halo_pad if halo_pad else 128)
    n_tiles = _cdiv(out_len, tl)

    # Single zero-pad pass: conv padding + tile alignment + trailing halo.
    # TODO(synk): fold this zero-fill into the kernel (masked edge loads) to
    # avoid one extra HBM pass over x.
    l_total = n_tiles * tl + halo_pad
    x = jnp.pad(x, ((0, 0), (0, 0), (pad_l, pad_r + (l_total - l_pad))))

    # Fold the K taps into the contraction dim: (C_out, K*C_in), lane-dense.
    w_folded = jnp.transpose(weight, (0, 2, 1)).reshape(c_out, k * c_in)
    w_folded = w_folded.astype(x.dtype)
    bias2d = bias.reshape(c_out, 1).astype(jnp.float32)

    in_specs = [
        # main columns of this output tile
        pl.BlockSpec((1, c_in, tl), lambda b, t: (b, 0, t)),
    ]
    operands = [x]
    if k > 1:
        ratio = tl // halo_pad
        # halo: the HALO_PAD columns immediately after the tile
        in_specs.append(
            pl.BlockSpec((1, c_in, halo_pad),
                         lambda b, t: (b, 0, (t + 1) * ratio)))
        operands.append(x)
        kernel = functools.partial(
            _conv1d_kernel, kernel_size=k, dilation=dilation, tile_l=tl)
    else:
        kernel = _conv1d_k1_kernel

    # weights / bias: constant index maps -> no re-DMA per tile
    in_specs += [
        pl.BlockSpec((c_out, k * c_in), lambda b, t: (0, 0)),
        pl.BlockSpec((c_out, 1), lambda b, t: (0, 0)),
    ]
    operands += [w_folded, bias2d]

    return pl.pallas_call(
        kernel,
        out_shape=jax.ShapeDtypeStruct((n, c_out, out_len), x.dtype),
        grid_spec=pltpu.PrefetchScalarGridSpec(
            num_scalar_prefetch=0,
            grid=(n, n_tiles),
            in_specs=in_specs,
            out_specs=pl.BlockSpec((1, c_out, tl), lambda b, t: (b, 0, t)),
        ),
        compiler_params=pltpu.CompilerParams(
            dimension_semantics=("parallel", "parallel"),
            vmem_limit_bytes=48 * 1024 * 1024,
        ),
    )(*operands)


def conv1d_same_padding(x, weight, bias, stride=1, padding="VALID", dilation=1):
    """JAX/Pallas re-implementation of the PyTorch `conv1d_same_padding` (groups=1)."""
    if isinstance(stride, (tuple, list)):
        stride = stride[0]
    if isinstance(dilation, (tuple, list)):
        dilation = dilation[0]

    k = weight.shape[2]

    if padding == "SAME":
        input_rows = x.shape[2]
        out_rows = (input_rows + stride - 1) // stride
        padding_rows = max(
            0, (out_rows - 1) * stride + (k - 1) * dilation + 1 - input_rows
        )
        rows_odd = padding_rows % 2
        pad_l = padding_rows // 2
        pad_r = padding_rows // 2 + int(rows_odd)
    elif padding == "VALID":
        pad_l = pad_r = 0
    elif isinstance(padding, int):
        pad_l = pad_r = padding
    else:
        raise ValueError(
            "Padding should be SAME, VALID or specific integer, not {}.".format(padding)
        )

    # Stride-1 conv in the kernel; strided conv = subsample of stride-1 output.
    # TODO(synk): compute only the strided output columns inside the kernel to
    # save ~stride x FLOPs / writeback (current module usages are stride=1).
    out_full = _pallas_conv1d_stride1(x, weight, bias, dilation, pad_l, pad_r)
    if stride > 1:
        out_full = out_full[:, :, ::stride]
    return out_full


class Conv1d:
    """Minimal JAX mirror of the PyTorch Conv1d module above (groups=1)."""

    # TODO(synk): groups > 1 not implemented (module default groups=1).

    def __init__(self, in_channels, out_channels, kernel_size, stride=1,
                 padding="VALID", dilation=1, bias=True, key=None):
        self.in_channels = in_channels
        self.out_channels = out_channels
        self.kernel_size = kernel_size
        self.stride = stride
        self.padding = padding
        self.dilation = dilation

        if key is None:
            key = jax.random.PRNGKey(0)
        kw, kb = jax.random.split(key)
        n = in_channels * kernel_size
        stdv = 1.0 / math.sqrt(n)
        self.weight = jax.random.uniform(
            kw, (out_channels, in_channels, kernel_size),
            minval=-stdv, maxval=stdv, dtype=jnp.float32)
        if bias:
            self.bias = jax.random.uniform(
                kb, (out_channels,), minval=-stdv, maxval=stdv, dtype=jnp.float32)
        else:
            self.bias = jnp.zeros((out_channels,), jnp.float32)

    def __call__(self, x):
        return conv1d_same_padding(
            x, self.weight, self.bias, self.stride, self.padding, self.dilation
        )


def _reference_conv1d(x, weight, bias, stride, padding, dilation):
    """Pure-JAX reference (lax.conv_general_dilated) with the same padding rule."""
    k = weight.shape[2]
    if padding == "SAME":
        input_rows = x.shape[2]
        out_rows = (input_rows + stride - 1) // stride
        padding_rows = max(
            0, (out_rows - 1) * stride + (k - 1) * dilation + 1 - input_rows
        )
        rows_odd = padding_rows % 2
        pads = [(padding_rows // 2, padding_rows // 2 + int(rows_odd))]
    elif padding == "VALID":
        pads = [(0, 0)]
    else:
        pads = [(padding, padding)]
    out = lax.conv_general_dilated(
        x, weight, window_strides=(stride,), padding=pads,
        rhs_dilation=(dilation,),
        dimension_numbers=("NCH", "OIH", "NCH"))
    return out + bias.reshape(1, -1, 1)


if __name__ == "__main__":
    key = jax.random.PRNGKey(0)
    k_x, k_m = jax.random.split(key)

    # small shapes: batch=2, in_channels=4, length=16, out_channels=8
    N, C_IN, L = 2, 4, 16
    C_OUT = 8
    x = jax.random.normal(k_x, (N, C_IN, L), dtype=jnp.float32)

    ok = True
    for kernel_size, padding, stride, dilation in (
        (3, "VALID", 1, 1),
        (3, "SAME", 1, 1),
        (3, "SAME", 2, 1),
        (3, "VALID", 1, 2),
        (3, 2, 1, 1),        # explicit integer padding
        (1, "SAME", 1, 1),   # pointwise conv (halo-free fast path)
    ):
        conv = Conv1d(C_IN, C_OUT, kernel_size, stride=stride, padding=padding,
                      dilation=dilation, key=k_m)
        y = conv(x)
        jax.block_until_ready(y)
        y_ref = _reference_conv1d(x, conv.weight, conv.bias, stride, padding, dilation)
        if y.shape != y_ref.shape or not jnp.allclose(y, y_ref, atol=1e-4, rtol=1e-4):
            ok = False

    if ok:
        print("KERNEL_OK")
</pallas_src>

<mosaic_0001>
module attributes {stable_mosaic.version = 11 : i64} {
  func.func @_conv1d_kernel(%arg0: i32, %arg1: i32, %arg2: memref<1x4x128xf32, #tpu.memory_space<vmem>>, %arg3: memref<1x4x128xf32, #tpu.memory_space<vmem>>, %arg4: memref<8x12xf32, #tpu.memory_space<vmem>>, %arg5: memref<8x1xf32, #tpu.memory_space<vmem>>, %arg6: memref<1x8x128xf32, #tpu.memory_space<vmem>>) attributes {dimension_semantics = [#tpu.dimension_semantics<parallel>, #tpu.dimension_semantics<parallel>], iteration_bounds = array<i64: 2, 1>, scalar_prefetch = 0 : i64, scratch_operands = 0 : i64, tpu.core_type = #tpu.core_type<tc>, window_params = [{transform_indices = @transform_0, window_bounds = array<i64: 1, 4, 128>}, {transform_indices = @transform_1, window_bounds = array<i64: 1, 4, 128>}, {pipeline_mode = #tpu.pipeline_mode<synchronous>, transform_indices = @transform_2, window_bounds = array<i64: 8, 12>}, {pipeline_mode = #tpu.pipeline_mode<synchronous>, transform_indices = @transform_3, window_bounds = array<i64: 8, 1>}, {transform_indices = @transform_4, window_bounds = array<i64: 1, 8, 128>}]} {
    %c0 = arith.constant 0 : index
    %c0_0 = arith.constant 0 : index
    %c0_1 = arith.constant 0 : index
    %0 = vector.load %arg2[%c0, %c0_0, %c0_1] : memref<1x4x128xf32, #tpu.memory_space<vmem>>, vector<1x4x128xf32>
    %1 = vector.shape_cast %0 : vector<1x4x128xf32> to vector<4x128xf32>
    %c0_2 = arith.constant 0 : index
    %c0_3 = arith.constant 0 : index
    %c0_4 = arith.constant 0 : index
    %2 = vector.load %arg3[%c0_2, %c0_3, %c0_4] : memref<1x4x128xf32, #tpu.memory_space<vmem>>, vector<1x4x128xf32>
    %3 = vector.shape_cast %2 : vector<1x4x128xf32> to vector<4x128xf32>
    %4 = tpu.concatenate %1, %3 in 1 : vector<4x128xf32>, vector<4x128xf32> -> vector<4x256xf32>
    %5 = vector.extract_strided_slice %4 {offsets = [0, 0], sizes = [4, 128], strides = [1, 1]} : vector<4x256xf32> to vector<4x128xf32>
    %6 = vector.extract_strided_slice %4 {offsets = [0, 1], sizes = [4, 128], strides = [1, 1]} : vector<4x256xf32> to vector<4x128xf32>
    %7 = vector.extract_strided_slice %4 {offsets = [0, 2], sizes = [4, 128], strides = [1, 1]} : vector<4x256xf32> to vector<4x128xf32>
    %8 = tpu.concatenate %5, %6, %7 in 0 : vector<4x128xf32>, vector<4x128xf32>, vector<4x128xf32> -> vector<12x128xf32>
    %c0_5 = arith.constant 0 : index
    %c0_6 = arith.constant 0 : index
    %9 = vector.load %arg4[%c0_5, %c0_6] : memref<8x12xf32, #tpu.memory_space<vmem>>, vector<8x12xf32>
    %cst = arith.constant dense<0.000000e+00> : vector<8x128xf32>
    %10 = tpu.matmul %9, %8, %cst {dimension_numbers = #tpu.dot_dimension_numbers<[1], [0], [0], [1], [0, 0, 1, 1], [], []>} : vector<8x12xf32>, vector<12x128xf32>, vector<8x128xf32> -> vector<8x128xf32>
    %c0_7 = arith.constant 0 : index
    %c0_8 = arith.constant 0 : index
    %11 = vector.load %arg5[%c0_7, %c0_8] : memref<8x1xf32, #tpu.memory_space<vmem>>, vector<8x1xf32>
    %12 = vector.broadcast %11 : vector<8x1xf32> to vector<8x128xf32>
    %13 = arith.addf %10, %12 : vector<8x128xf32>
    %c0_9 = arith.constant 0 : index
    %c0_10 = arith.constant 0 : index
    %c0_11 = arith.constant 0 : index
    %14 = vector.load %arg6[%c0_9, %c0_10, %c0_11] : memref<1x8x128xf32, #tpu.memory_space<vmem>>, vector<1x8x128xf32>
    %15 = vector.shape_cast %14 : vector<1x8x128xf32> to vector<8x128xf32>
    %16 = vector.shape_cast %13 : vector<8x128xf32> to vector<1x8x128xf32>
    tpu.vector_store %arg6[%c0_9, %c0_10, %c0_11], %16 {strides = array<i32>} : memref<1x8x128xf32, #tpu.memory_space<vmem>>, vector<1x8x128xf32>,
    return
  }
  func.func @transform_0(%arg0: i32, %arg1: i32) -> (i32, i32, i32) {
    %c0_i32 = arith.constant 0 : i32
    %c0_i32_0 = arith.constant 0 : i32
    return %arg0, %c0_i32, %arg1 : i32, i32, i32
  }
  func.func @transform_1(%arg0: i32, %arg1: i32) -> (i32, i32, i32) {
    %c1_i32 = arith.constant 1 : i32
    %0 = arith.addi %arg1, %c1_i32 : i32
    %c1_i32_0 = arith.constant 1 : i32
    %1 = arith.muli %0, %c1_i32_0 : i32
    %c0_i32 = arith.constant 0 : i32
    %c0_i32_1 = arith.constant 0 : i32
    return %arg0, %c0_i32, %1 : i32, i32, i32
  }
  func.func @transform_2(%arg0: i32, %arg1: i32) -> (i32, i32) {
    %c0_i32 = arith.constant 0 : i32
    %c0_i32_0 = arith.constant 0 : i32
    %c0_i32_1 = arith.constant 0 : i32
    return %c0_i32, %c0_i32_0 : i32, i32
  }
  func.func @transform_3(%arg0: i32, %arg1: i32) -> (i32, i32) {
    %c0_i32 = arith.constant 0 : i32
    %c0_i32_0 = arith.constant 0 : i32
    %c0_i32_1 = arith.constant 0 : i32
    return %c0_i32, %c0_i32_0 : i32, i32
  }
  func.func @transform_4(%arg0: i32, %arg1: i32) -> (i32, i32, i32) {
    %c0_i32 = arith.constant 0 : i32
    %c0_i32_0 = arith.constant 0 : i32
    return %arg0, %c0_i32, %arg1 : i32, i32, i32
  }
}

</mosaic_0001>

<bundles_post_ra>
// kernel: tpu_custom_call.1
= control target key start
LH: loop header
LB: loop body
LE: loop exit
PB: predicated region body
PF: predicated region fallthrough
CT: control target
= control target key end

     0   :  { %9 = vsyncpa [#allocation3], 0  ;;  %s1035_s0 = inlined_call_operand.hbm [shape: f32[2,4,256], index: 0, kind: input, shape index: {}]   ;;  %s1036_s1 = inlined_call_operand.hbm [shape: f32[2,4,256], index: 1, kind: input, shape index: {}]   ;;  %s1037_s2 = inlined_call_operand.vmem [shape: f32[8,12], index: 2, kind: input, shape index: {}]   ;;  %s1038_s3 = inlined_call_operand.vmem [shape: f32[8,1], index: 3, kind: input, shape index: {}]   ;;  %s1039_s4 = inlined_call_operand.hbm [shape: f32[2,8,14], index: 4, kind: output, shape index: {}]  }
   0x1   :  { %11 = vsyncpa [#allocation3 + $0x1], 0 }
   0x2   :  { %12 = vsyncpa [#allocation6], 0 }
   0x3   :  { %14 = vsyncpa [#allocation6 + $0x1], 0 }
   0x4   :  { %15 = vsyncpa [#allocation4], 0 }
   0x5   :  { %17 = vsyncpa [#allocation4 + $0x1], 0  ;;  %s809_s15 = smov 0   ;;  %s811_s16 = smov 0  }
   0x6   :  { %s813_s17 = smov 0   ;;  %s815_s18 = smov 0  }
   0x7   :  { %s817_s19 = smov 0   ;;  %s819_s20 = smov 0  }
   0x8 LB: > { %s503_s21 = sadd.s32 4294967295, %s772_s20   ;;  %s504_s22 = sadd.s32 4294967294, %s772_s20   ;;  %s772_s20 = sphi %s819_s20, %s23_s20   ;;  %s768_s19 = sphi %s817_s19, %s1059_s19   ;;  %s764_s18 = sphi %s815_s18, %s1058_s18   ;;  %s760_s17 = sphi %s813_s17, %s1057_s17   ;;  %s756_s16 = sphi %s811_s16, %s1056_s16   ;;  %s752_s15 = sphi %s809_s15, %s1055_s15  }
   0x9   : > { %s35_s23 = sadd.s32 1, %s768_s19  ;;  %s44_s24 = sadd.s32 1, %s760_s17 }
   0xa   : > { %p37_p0 = scmp.ge.s32.totalorder %s35_s23, 2  ;;  %p51_p1 = scmp.ne.s32.totalorder %s760_s17, %s756_s16 }
   0xb   : > { %p52_p2 = scmp.eq.s32.totalorder %s772_s20, 0  ;;  %p57_p3 = scmp.ne.s32.totalorder %s756_s16, %s752_s15 }
   0xc   : > { %s1061_s23 = smov (%p37_p0, %s35_s23), 0  ;;  %p58_p5 = scmp.eq.s32.totalorder %s503_s21, 0 }
   0xd   : > { %p850_p4 = por %p52_p2, %p51_p1  ;;  %s39_s26 = ssub.s32 %s768_s19, %s1061_s23 }
   0xe   : > { %p155_p6 = scmp.eq.s32.totalorder %s503_s21, 1  ;;  %p42_p7 = scmp.eq.s32.totalorder %s39_s26, 0 }
   0xf   : > { %p856_p8 = por %p58_p5, %p57_p3  ;;  %p161_p10 = scmp.eq.s32.totalorder %s504_s22, 1 }
  0x10   : > { %p860_p9 = por %p155_p6, %p51_p1  ;;  %p556_p13 = scmp.lt.s32.totalorder %s772_s20, 2 }
  0x11   : > { %s1043_s27 = scalar_select %p856_p8, 1, 0 }
  0x12   : > { %s1044_s28 = scalar_select %p860_p9, 1, 0 }
  0x13   : > { %s865_s29 = scalar_select %p42_p7, %s760_s17, %s44_s24  }
  0x14   : > { %p867_p11 = por %p161_p10, %p57_p3  ;;  %s874_s5 = sand.u32 1, %s760_s17  }
  0x15   : > { %s507_s6 = sshll.u32 %s874_s5, 2  ;;  %s523_s7 = sshll.u32 %s768_s19, 7 }
  0x16   : > { %s1045_s30 = scalar_select %p867_p11, 1, 0 }
  0x17   : > { %s883_s10 = scalar_lea.hbm %s1035_s0, %s523_s7  ;;  %s191_s11 = scalar_lea.vmem [#allocation2], %s507_s6 }
  0x18   : > { %s200_s12 = sshll.u32 %s191_s11, 4  ;;  %p891_p0 = pnand %p556_p13, %p850_p4  ;;  %s887_s12 = int_to_ptr.vmem [resolvable:$true] %s200_s12 }
  0x19   : > { %s188_s14 = scalar_lea.sflag [#allocation3], %s874_s5  ;;  %s625_s21 = scalar_lea.hbm %s883_s10, 64 }
  0x1a   : > { %p626_p3 = scmp.ne.s32.totalorder %s883_s10, %s625_s21  ;;  %p627_p5 = pneg %p891_p0 }
  0x1b   : > { %s630_s25 = scalar_lea.hbm %s1035_s0, 256  ;;  %p631_p4 = scmp.lt.u32.totalorder %s883_s10, %s1035_s0 }
  0x1c   : > { %p628_p6 = pnand %p627_p5, %p626_p3  ;;  %p632_p10 = scmp.lt.u32.totalorder %s630_s25, %s625_s21 }
  0x1d   : > { %p634_p12 = scmp.lt.u32.totalorder %s625_s21, %s883_s10 }
  0x1e   : > { %p629_p7 = pneg %p628_p6  ;;  %p633_p13 = por %p632_p10, %p631_p4 }
  0x20   : > { %p635_p1 = por %p634_p12, %p633_p13 }
  0x22   : > { %p636_p2 = pnand %p635_p1, %p629_p7 }
  0x24   : > { %639 = shalt.err (!%p636_p2)
}
  0x25   : > { %s640_s9 = scalar_lea.vmem %s887_s12, 64  ;;  %s774_s11 = smov [#allocation2]  }
  0x26   : > { %p641_p3 = scmp.ne.s32.totalorder %s887_s12, %s640_s9  ;;  %s645_s22 = sshll.u32 %s774_s11, 4  ;;  %s646_s22 = int_to_ptr.vmem [resolvable:$false] %s645_s22 }
  0x27   : > { %s647_s24 = scalar_lea.vmem %s646_s22, 128  ;;  %p648_p9 = scmp.lt.s32.totalorder %s887_s12, %s646_s22 }
  0x28   : > { %p643_p6 = pnand %p641_p3, %p627_p5  ;;  %p649_p4 = scmp.lt.s32.totalorder %s647_s24, %s640_s9 }
  0x2a   : > { %p644_p11 = pneg %p643_p6  ;;  %p650_p10 = por %p649_p4, %p648_p9 }
  0x2c   : > { %p651_p12 = pnand %p650_p10, %p644_p11 }
  0x2e   : > { %654 = shalt.err (!%p651_p12)
}
  0x2f   : > { %548 = dma.hbm_to_vmem [thread:$0]  (!%p891_p0), %s883_s10, 64, %s887_s12, %s188_s14  }
  0x30   : > { %p1047_p1 = scmp.lt.s32.totalorder %s772_s20, 3  ;;  %p1048_p2 = scmp.ge.s32.totalorder %s772_s20, 1 }
  0x31   : > { %s436_s8 = scalar_lea.hbm %s1036_s1, %s523_s7  ;;  %s211_s9 = scalar_lea.vmem [#allocation5], %s507_s6 }
  0x32   : > { %p927_p7 = pnand %p1048_p2, %p1047_p1  ;;  %s221_s11 = sshll.u32 %s211_s9, 4  ;;  %s222_s11 = int_to_ptr.vmem [resolvable:$true] %s221_s11 }
  0x33   : > { %s938_s22 = scalar_lea.hbm %s436_s8, 64  ;;  %s208_s10 = scalar_lea.sflag [#allocation6], %s874_s5 }
  0x34   : > { %s1049_s21 = scalar_select %p927_p7, 1, 0 }
  0x35   : > { %s685_s12 = scalar_lea.hbm %s436_s8, 128  ;;  %s660_s7 = scalar_lea.hbm %s1036_s1, 256 }
  0x36   : > { %p656_p9 = scmp.ne.s32.totalorder %s938_s22, %s685_s12  ;;  %p661_p3 = scmp.lt.u32.totalorder %s938_s22, %s1036_s1 }
  0x37   : > { %p662_p6 = scmp.lt.u32.totalorder %s660_s7, %s685_s12  ;;  %p664_p10 = scmp.lt.u32.totalorder %s685_s12, %s938_s22 }
  0x38   : > { %p658_p11 = pnand %p656_p9, %p627_p5 }
  0x39   : > { %p663_p4 = por %p662_p6, %p661_p3 }
  0x3a   : > { %p659_p13 = pneg %p658_p11 }
  0x3b   : > { %p665_p12 = por %p664_p10, %p663_p4 }
  0x3d   : > { %p666_p1 = pnand %p665_p12, %p659_p13 }
  0x3f   : > { %669 = shalt.err (!%p666_p1)
}
  0x40   : > { %s670_s5 = scalar_lea.vmem %s222_s11, 64  ;;  %s775_s26 = smov [#allocation5]  }
  0x41   : > { %p671_p2 = scmp.ne.s32.totalorder %s222_s11, %s670_s5  ;;  %s675_s8 = sshll.u32 %s775_s26, 4  ;;  %s676_s8 = int_to_ptr.vmem [resolvable:$false] %s675_s8 }
  0x42   : > { %s677_s9 = scalar_lea.vmem %s676_s8, 128  ;;  %p678_p8 = scmp.lt.s32.totalorder %s222_s11, %s676_s8 }
  0x43   : > { %p673_p9 = pnand %p671_p2, %p627_p5  ;;  %p679_p7 = scmp.lt.s32.totalorder %s677_s9, %s670_s5 }
  0x45   : > { %p674_p11 = pneg %p673_p9  ;;  %p680_p3 = por %p679_p7, %p678_p8 }
  0x47   : > { %p681_p6 = pnand %p680_p3, %p674_p11 }
  0x49   : > { %684 = shalt.err (!%p681_p6)
}
  0x4a   : > { %551 = dma.hbm_to_vmem [thread:$0]  (!%p891_p0), %s938_s22, 64, %s222_s11, %s208_s10  }
  0x4b   : > { %p1050_p13 = scmp.ne.s32.totalorder %s1049_s21, 0 }
  0x4c   : > { %s962_s12 = sand.u32 (!%p1050_p13), 1, %s756_s16   ;;  %p1051_p5 = scmp.ne.s32.totalorder (!%p1050_p13), %s1043_s27, 0 }
  0x4d   : > { %230 = sbr.rel (%p1050_p13) target bundleno = 447 (0x1bf), region = 36  ;;  %s514_s14 = sshll.u32 (!%p1050_p13), %s962_s12, 2 }
  0x4e   : > { %s233_s24 = scalar_lea.sflag (!%p1050_p13), [#allocation3], %s962_s12  ;;  %s236_s7 = scalar_lea.vmem (!%p1050_p13), [#allocation2], %s514_s14 }
  0x54   : > { %739 = dma.done.wait (%p1051_p5), %s233_s24, 64  }
  0x55   : > { %741 = vsyncadd (%p1051_p5), %s233_s24, 4294967232  ;;  %s242_s13 = scalar_lea.sflag [#allocation6], %s962_s12  ;;  %s245_s11 = scalar_lea.vmem [#allocation5], %s514_s14 }
  0x56   : > { %743 = dma.done.wait (%p1051_p5), %s242_s13, 64  }
  0x57   : > { %745 = vsyncadd (%p1051_p5), %s242_s13, 4294967232  ;;  %v776_v0 = vmov 0.0|0.0   ;;  %v276_v1 = vld [vmem:[%s236_s7] sm:$0xf]  ;;  %v277_v2 = vld [vmem:[%s245_s11] sm:$0xf] }
  0x58   : > { %535 = vmatprep.subr.bf16.mxu0 %v776_v0  ;;  %v280_v3 = vrot.slane %v276_v1, 4  ;;  %v281_v4 = vrot.slane %v277_v2, 4  ;;  %vm777_vm0 = vmmov 0   ;;  %v778_v6 = vmov 0.0   ;;  %v298_v7 = vld [vmem:[%s1038_s3] sm:$0xff]  ;;  %s779_s10 = smov 127  }
  0x59   : > { %532 = vmatprep.mubr.msk.f32.mxu0 %vm777_vm0, %v778_v6  ;;  %v618_v8 = vpack.i.bf16 %v277_v2, %v276_v1  ;;  %v780_v9 = vmov 0   ;;  %s781_s27 = smov 126   ;;  %vm286_vm1 = vcmask 1039360   ;;  %vm293_vm2 = vcmask 1031168   ;;  %v297_v20 = vld [vmem:[%s1037_s2] sm:$0xff]  ;;  %s516_s5 = sshll.u32 %s962_s12, 3 }
  0x5a   : > { %v613_v5 = vpack.i.bf16 %v281_v4, %v280_v3  ;;  %623 = vset.pattern.permute.xlu1 %v780_v9  ;;  %624 = vset.pattern.permute.xlu0 %v780_v9  ;;  %vm295_vm3 = vcmask 1043456   ;;  %vm782_vm4 = vmmov 1   ;;  %vm304_vm6 = vcmask 97280   ;;  %s520_s26 = sshll.u32 %s764_s18, 7  ;;  %s274_s8 = scalar_lea.vmem [#allocation7], %s516_s5 }
  0x5b   : > { %301 = vperm.xlu1 %623, %v298_v7   ;;  %vm537_vm5 = vmpackc.low %vm295_vm3, %vm782_vm4  ;;  %s396_s9 = sshll.u32 %s274_s8, 4  ;;  %s986_s7 = scalar_lea.hbm %s1039_s4, %s520_s26  ;;  %s988_s9 = int_to_ptr.vmem [resolvable:$true] %s396_s9 }
  0x5c   : > { %614 = vrot.lane.b32.xlu0 %v613_v5, %s779_s10  ;;  %s382_s13 = scalar_lea.sflag [#allocation4], %s962_s12  ;;  %s686_s11 = scalar_lea.vmem %s988_s9, 128 }
  0x5d   : > { %p687_p8 = scmp.ne.s32.totalorder %s988_s9, %s686_s11  ;;  %p1052_p0 = scmp.ne.s32.totalorder %s1044_s28, 0 }
  0x5e   : > { %s783_s18 = smov [#allocation7]  }
  0x5f   : > { %p688_p7 = pnand %p687_p8, %p1052_p0  ;;  %s690_s21 = sshll.u32 %s783_s18, 4  ;;  %s691_s21 = int_to_ptr.vmem [resolvable:$false] %s690_s21 }
  0x60   : > { %619 = vrot.lane.b32.xlu0 %v618_v8, %s781_s27  ;;  %s692_s22 = scalar_lea.vmem %s691_s21, 256  ;;  %p693_p10 = scmp.lt.s32.totalorder %s988_s9, %s691_s21 }
  0x61   : > { %p689_p4 = pneg %p688_p7  ;;  %p694_p12 = scmp.lt.s32.totalorder %s692_s22, %s686_s11 }
  0x63   : > { %p695_p1 = por %p694_p12, %p693_p10 }
  0x65   : > { %p696_p2 = pnand %p695_p1, %p689_p4 }
  0xce   : > { %v615_v10 = vpop.permute.xlu0 %614 }
  0xcf   : > { %v617_v11 = vunpack.i.h.bf16 %v615_v10  ;;  %v616_v12 = vunpack.i.l.bf16 %v615_v10 }
  0xd1   : > { %v287_v13 = vsel %vm286_vm1, %v616_v12, %v617_v11 }
  0xd2   : > { %v620_v14 = vpop.permute.xlu0 %619  ;;  %v296_v18 = vsel %vm295_vm3, %v276_v1, %v287_v13 }
  0xd3   : > { %v622_v15 = vunpack.i.h.bf16 %v620_v14  ;;  %v621_v16 = vunpack.i.l.bf16 %v620_v14 }
  0xd5   : > { %v294_v17 = vsel %vm293_vm2, %v621_v16, %v622_v15 }
  0xd6   : > { %v536_v19 = vpack.c.bf16 %v294_v17, %v296_v18 }
  0xd8   : > { %538 = vmatpush3.bf16.msk.msra.mxu0 %vm537_vm5, %v536_v19 }
  0xda   : > { %v302_v21 = vpop.permute.xlu1 %301 }
  0xdb   : > { %533 = vmatmul.mubr.msk.f32.vlgmr.msra.gmra.mrb[0].mxu0 %vm304_vm6, %v297_v20 }
 0x1ae   : > { %v376_v22 = vpop.f32.mrb[0].mxu0 }
 0x1af   : > { %v377_v23 = vadd.f32 %v376_v22, %v302_v21  ;;  %v534_v24 = vpop.f32.mrb[1].mxu0 }
 0x1b1   : > { %380 = vst [vmem:[%s274_s8] sm:$0xff] %v377_v23 }
 0x1b2   : > { %699 = shalt.err (!%p696_p2)
}
 0x1b3   : > { %s700_s12 = scalar_lea.hbm %s986_s7, 128  ;;  %s704_s25 = scalar_lea.hbm %s1039_s4, 256 }
 0x1b4   : > { %p701_p9 = scmp.ne.s32.totalorder %s986_s7, %s700_s12  ;;  %p705_p6 = scmp.lt.u32.totalorder %s986_s7, %s1039_s4 }
 0x1b5   : > { %p706_p13 = scmp.lt.u32.totalorder %s704_s25, %s700_s12  ;;  %p708_p8 = scmp.lt.u32.totalorder %s700_s12, %s986_s7 }
 0x1b6   : > { %p702_p11 = pnand %p701_p9, %p1052_p0 }
 0x1b7   : > { %p707_p5 = por %p706_p13, %p705_p6 }
 0x1b8   : > { %p703_p3 = pneg %p702_p11 }
 0x1b9   : > { %p709_p7 = por %p708_p8, %p707_p5 }
 0x1bb   : > { %p710_p4 = pnand %p709_p7, %p703_p3 }
 0x1bd   : > { %713 = shalt.err (!%p710_p4)
}
 0x1be   : > { %543 = dma.vmem_to_hbm [thread:$0]  (%p1052_p0), %s988_s9, 128, %s986_s7, %s382_s13  }
 0x1bf PF: > { %s408_s26 = sand.u32 1, %s752_s15   ;;  %p1053_p10 = scmp.ne.s32.totalorder %s1045_s30, 0 }
 0x1c0   : > { %p1054_p12 = scmp.ge.s32.totalorder %s772_s20, 2  ;;  %s409_s8 = scalar_lea.sflag [#allocation4], %s408_s26 }
 0x1c2   : > { %p553_p1 = pnand %p1054_p12, %p1053_p10 }
 0x1c4   : > { %747 = dma.done.wait (!%p553_p1), %s409_s8, 128  }
 0x1c5   : > { %749 = vsyncadd (!%p553_p1), %s409_s8, 4294967168  ;;  %s23_s20 = sadd.s32 1, %s772_s20   ;;  %s1055_s15 = smov %s756_s16 }
 0x1c6   : > { %p20_p2 = scmp.ge.s32.totalorder %s23_s20, 4   ;;  %s1056_s16 = smov %s760_s17 }
 0x1c7   : > { %s1057_s17 = smov %s865_s29  ;;  %s1058_s18 = smov %s768_s19 }
 0x1c8   : > { %s1059_s19 = smov %s1061_s23  ;;  %22 = sbr.rel (!%p20_p2) target bundleno = 8 (0x8), region = 94 }
 0x1cf   :  { %414 = vsyncpa [#allocation3], 1 }
 0x1d0   :  { %416 = vsyncpa [#allocation3 + $0x1], 1 }
 0x1d1   :  { %417 = vsyncpa [#allocation6], 1 }
 0x1d2   :  { %419 = vsyncpa [#allocation6 + $0x1], 1 }
 0x1d3   :  { %420 = vsyncpa [#allocation4], 1 }
 0x1d4   :  { %422 = vsyncpa [#allocation4 + $0x1], 1 }

</bundles_post_ra>
